<compile_context>
chip_gen: v7x
topology: tpu7x:2x2x1
jax: 0.10.0
libtpu: 0.0.40
codegen_flags: <defaults>
</compile_context>

<pallas_src>
import functools

import jax
import jax.numpy as jnp
from jax.experimental import pallas as pl
from jax.experimental.pallas import tpu as pltpu

LANE = 128  # TPU vreg lane width


def _round_up(x, m):
    return (x + m - 1) // m * m


def _chip_alignment_and_vmem_cap():
    """MXU-friendly dim alignment + safe scoped-VMEM ceiling for this chip."""
    try:
        kind = jax.devices()[0].device_kind.lower()
    except Exception:
        kind = ""
    if "v7" in kind:
        return 256, 48 << 20    # 2x256^2 MXU, 64 MiB physical VMEM
    if "v6" in kind:
        return 256, 100 << 20   # 2x256^2 MXU, 128 MiB physical VMEM
    return 128, 100 << 20       # v5e / older: 128-wide MXU tiles, 128 MiB VMEM


def _gcn_fused_kernel(*refs, num_layers):
    """Fused GCN stack: H_{i+1} = act(Ahat @ (H_i @ W_i) + b_i).

    Arg order: a_ref, h_ref, (w_0, b_0, ..., w_{L-1}, b_{L-1}), o_ref.
    Everything is VMEM-resident for the whole call; H never touches HBM.
    MXU matmuls take bf16 inputs with f32 accumulation; the bias-add + ReLU
    epilogue runs once per layer in f32 on the VPU, then casts back to bf16.
    Note: padded node rows become relu(b) after each bias add; that is
    harmless because A's padded columns are zero and the rows are sliced off
    outside the kernel, but don't read padded rows for row-wise stats.
    """
    a_ref, h_ref = refs[0], refs[1]
    o_ref = refs[-1]
    wb_refs = refs[2:2 + 2 * num_layers]

    a = a_ref[...]                 # (Np, Np)      bf16
    h = h_ref[...]                 # (Np, F0p)     bf16
    for i in range(num_layers):    # static Python loop (num_layers is small)
        w = wb_refs[2 * i][...]         # (Fi_p, Fo_p)  bf16
        b = wb_refs[2 * i + 1][...]     # (1, Fo_p)     f32
        # Feature transform first (H @ W), then aggregate (Ahat @ ...).
        hw = jnp.dot(h, w, preferred_element_type=jnp.float32)
        agg = jnp.dot(a, hw.astype(jnp.bfloat16),
                      preferred_element_type=jnp.float32)
        hf = agg + b                               # f32 epilogue (v5e: no bf16 VPU)
        if i != num_layers - 1:
            h = jnp.maximum(hf, 0.0).astype(jnp.bfloat16)   # one fused pass
        else:
            o_ref[...] = hf.astype(o_ref.dtype)


def gcn_forward(a_hat, features, params):
    """params: list of (W, b). ReLU on all layers except the last."""
    n, f_in = features.shape
    num_layers = len(params)
    align, vmem_cap = _chip_alignment_and_vmem_cap()

    f_dims = [f_in] + [w.shape[1] for (w, _) in params]
    f_pads = [_round_up(d, align) for d in f_dims]     # per-layer lane padding
    n_pad = _round_up(n, max(align, LANE))             # full-tile node dim

    # Zero-pad directly in bf16 (no f32 HBM temporaries). Zeros contribute
    # exactly 0 through both matmuls, so real rows/lanes are unaffected.
    a_p = (jnp.zeros((n_pad, n_pad), jnp.bfloat16)
           .at[:n, :n].set(a_hat.astype(jnp.bfloat16)))
    h_p = (jnp.zeros((n_pad, f_pads[0]), jnp.bfloat16)
           .at[:n, :f_in].set(features.astype(jnp.bfloat16)))

    wb_inputs = []
    for i, (w, b) in enumerate(params):
        fi, fo = w.shape
        w_p = (jnp.zeros((f_pads[i], f_pads[i + 1]), jnp.bfloat16)
               .at[:fi, :fo].set(w.astype(jnp.bfloat16)))
        b_p = jnp.zeros((1, f_pads[i + 1]), jnp.float32).at[0, :fo].set(b)
        wb_inputs += [w_p, b_p]

    # Resident VMEM footprint (bytes): A + H_in + per-layer W/b + out (f32)
    # + headroom for the two largest f32 intermediates per layer.
    f_max = max(f_pads)
    resident = 2 * n_pad * n_pad                       # A  (bf16)
    resident += 2 * n_pad * f_pads[0]                  # H_in (bf16)
    resident += 4 * n_pad * f_pads[-1]                 # out (f32)
    resident += sum(2 * f_pads[i] * f_pads[i + 1] + 4 * f_pads[i + 1]
                    for i in range(num_layers))        # W_i + b_i
    resident += 2 * 4 * n_pad * f_max                  # live f32 intermediates
    vmem_limit = int(min(max(resident + (4 << 20), 32 << 20), vmem_cap))

    flops = 0
    for i in range(num_layers):
        flops += 2 * n_pad * f_pads[i] * f_pads[i + 1]  # H @ W
        flops += 2 * n_pad * n_pad * f_pads[i + 1]      # Ahat @ HW
    bytes_accessed = (2 * n_pad * n_pad + 2 * n_pad * f_pads[0]
                      + 4 * n_pad * f_pads[-1]
                      + sum(2 * f_pads[i] * f_pads[i + 1] + 4 * f_pads[i + 1]
                            for i in range(num_layers)))

    kernel = functools.partial(_gcn_fused_kernel, num_layers=num_layers)
    vmem = pl.BlockSpec(memory_space=pltpu.MemorySpace.VMEM)
    out_p = pl.pallas_call(
        kernel,
        out_shape=jax.ShapeDtypeStruct((n_pad, f_pads[-1]), jnp.float32),
        in_specs=[vmem] * (2 + 2 * num_layers),
        out_specs=vmem,
        compiler_params=pltpu.CompilerParams(vmem_limit_bytes=vmem_limit),
        cost_estimate=pl.CostEstimate(flops=int(flops), transcendentals=0,
                                      bytes_accessed=int(bytes_accessed)),
    )(a_p, h_p, *wb_inputs)

    f_out = params[-1][0].shape[1]
    return out_p[:n, :f_out]


def build_normalized_adjacency(key, n):
    """Random symmetric 0/1 adjacency (no self loops), DGL 'both' normalization."""
    upper = (jax.random.uniform(key, (n, n)) < 0.4).astype(jnp.float32)
    upper = jnp.triu(upper, k=1)
    adj = upper + upper.T
    deg = jnp.clip(adj.sum(axis=1), 1.0, None)   # clamp (DGL would need allow_zero_in_degree)
    d_inv_sqrt = 1.0 / jnp.sqrt(deg)
    a_hat = adj * d_inv_sqrt[:, None] * d_inv_sqrt[None, :]
    return a_hat.astype(jnp.float32)


def init_params(key, in_size, hid_size, out_size, num_layers):
    """Deterministic xavier-uniform-like weights, zero biases (DGL defaults)."""
    sizes = [(in_size, hid_size)]
    sizes += [(hid_size, hid_size) for _ in range(num_layers)]
    sizes += [(hid_size, out_size)]
    params = []
    for fi, fo in sizes:
        key, sub = jax.random.split(key)
        limit = jnp.sqrt(6.0 / (fi + fo))
        w = jax.random.uniform(sub, (fi, fo), jnp.float32, -limit, limit)
        b = jnp.zeros((fo,), jnp.float32)
        params.append((w, b))
    return params


if __name__ == "__main__":
    # Small, module-consistent shapes.
    N = 8            # number of graph nodes
    IN_SIZE = 16
    HID_SIZE = 32
    OUT_SIZE = 8
    NUM_LAYERS = 1   # -> 3 GraphConv layers total (in->hid, hid->hid, hid->out)

    root = jax.random.PRNGKey(0)
    k_adj, k_feat, k_par = jax.random.split(root, 3)

    a_hat = build_normalized_adjacency(k_adj, N)
    features = jax.random.normal(k_feat, (N, IN_SIZE), jnp.float32)
    params = init_params(k_par, IN_SIZE, HID_SIZE, OUT_SIZE, NUM_LAYERS)

    gcn_fn = jax.jit(gcn_forward)
    out = gcn_fn(a_hat, features, params)
    out = jax.block_until_ready(out)

    assert out.shape == (N, OUT_SIZE), out.shape
    assert out.dtype == jnp.float32

    # Reference 1: same math with matching bf16-input / f32-accumulation precision.
    h_ref = features
    for i, (w, b) in enumerate(params):
        hw = jnp.dot(h_ref.astype(jnp.bfloat16), w.astype(jnp.bfloat16),
                     preferred_element_type=jnp.float32)
        h_ref = jnp.dot(a_hat.astype(jnp.bfloat16), hw.astype(jnp.bfloat16),
                        preferred_element_type=jnp.float32) + b
        if i != len(params) - 1:
            h_ref = jnp.maximum(h_ref, 0.0)
    assert jnp.allclose(out, h_ref, atol=2e-3, rtol=2e-3), (
        float(jnp.max(jnp.abs(out - h_ref))))

    # Reference 2: full-f32 math (loose tolerance for bf16 MXU inputs).
    h32 = features
    for i, (w, b) in enumerate(params):
        h32 = a_hat @ (h32 @ w) + b
        if i != len(params) - 1:
            h32 = jnp.maximum(h32, 0.0)
    assert jnp.allclose(out, h32, atol=5e-2, rtol=5e-2), (
        float(jnp.max(jnp.abs(out - h32))))

    print("KERNEL_OK")
</pallas_src>

<mosaic_0001>
module attributes {stable_mosaic.version = 11 : i64} {
  func.func @_gcn_fused_kernel(%arg0: memref<128x128xbf16, #tpu.memory_space<vmem>>, %arg1: memref<128x128xbf16, #tpu.memory_space<vmem>>, %arg2: memref<128x128xbf16, #tpu.memory_space<vmem>>, %arg3: memref<1x128xf32, #tpu.memory_space<vmem>>, %arg4: memref<128x128xbf16, #tpu.memory_space<vmem>>, %arg5: memref<1x128xf32, #tpu.memory_space<vmem>>, %arg6: memref<128x128xbf16, #tpu.memory_space<vmem>>, %arg7: memref<1x128xf32, #tpu.memory_space<vmem>>, %arg8: memref<128x128xf32, #tpu.memory_space<vmem>>) attributes {dimension_semantics = [], scalar_prefetch = 0 : i64, scratch_operands = 0 : i64, tpu.core_type = #tpu.core_type<tc>} {
    %c0 = arith.constant 0 : index
    %c0_0 = arith.constant 0 : index
    %0 = vector.load %arg0[%c0, %c0_0] : memref<128x128xbf16, #tpu.memory_space<vmem>>, vector<128x128xbf16>
    %c0_1 = arith.constant 0 : index
    %c0_2 = arith.constant 0 : index
    %1 = vector.load %arg1[%c0_1, %c0_2] : memref<128x128xbf16, #tpu.memory_space<vmem>>, vector<128x128xbf16>
    %c0_3 = arith.constant 0 : index
    %c0_4 = arith.constant 0 : index
    %2 = vector.load %arg2[%c0_3, %c0_4] : memref<128x128xbf16, #tpu.memory_space<vmem>>, vector<128x128xbf16>
    %c0_5 = arith.constant 0 : index
    %c0_6 = arith.constant 0 : index
    %3 = vector.load %arg3[%c0_5, %c0_6] : memref<1x128xf32, #tpu.memory_space<vmem>>, vector<1x128xf32>
    %cst = arith.constant dense<0.000000e+00> : vector<128x128xf32>
    %4 = tpu.matmul %1, %2, %cst {dimension_numbers = #tpu.dot_dimension_numbers<[1], [0], [0], [1], [0, 0, 1, 1], [], []>} : vector<128x128xbf16>, vector<128x128xbf16>, vector<128x128xf32> -> vector<128x128xf32>
    %5 = arith.truncf %4 : vector<128x128xf32> to vector<128x128xbf16>
    %cst_7 = arith.constant dense<0.000000e+00> : vector<128x128xf32>
    %6 = tpu.matmul %0, %5, %cst_7 {dimension_numbers = #tpu.dot_dimension_numbers<[1], [0], [0], [1], [0, 0, 1, 1], [], []>} : vector<128x128xbf16>, vector<128x128xbf16>, vector<128x128xf32> -> vector<128x128xf32>
    %7 = vector.broadcast %3 : vector<1x128xf32> to vector<128x128xf32>
    %8 = arith.addf %6, %7 : vector<128x128xf32>
    %cst_8 = arith.constant 0.000000e+00 : f32
    %9 = vector.broadcast %cst_8 : f32 to vector<128x128xf32>
    %10 = arith.maximumf %8, %9 : vector<128x128xf32>
    %11 = arith.truncf %10 : vector<128x128xf32> to vector<128x128xbf16>
    %c0_9 = arith.constant 0 : index
    %c0_10 = arith.constant 0 : index
    %12 = vector.load %arg4[%c0_9, %c0_10] : memref<128x128xbf16, #tpu.memory_space<vmem>>, vector<128x128xbf16>
    %c0_11 = arith.constant 0 : index
    %c0_12 = arith.constant 0 : index
    %13 = vector.load %arg5[%c0_11, %c0_12] : memref<1x128xf32, #tpu.memory_space<vmem>>, vector<1x128xf32>
    %cst_13 = arith.constant dense<0.000000e+00> : vector<128x128xf32>
    %14 = tpu.matmul %11, %12, %cst_13 {dimension_numbers = #tpu.dot_dimension_numbers<[1], [0], [0], [1], [0, 0, 1, 1], [], []>} : vector<128x128xbf16>, vector<128x128xbf16>, vector<128x128xf32> -> vector<128x128xf32>
    %15 = arith.truncf %14 : vector<128x128xf32> to vector<128x128xbf16>
    %cst_14 = arith.constant dense<0.000000e+00> : vector<128x128xf32>
    %16 = tpu.matmul %0, %15, %cst_14 {dimension_numbers = #tpu.dot_dimension_numbers<[1], [0], [0], [1], [0, 0, 1, 1], [], []>} : vector<128x128xbf16>, vector<128x128xbf16>, vector<128x128xf32> -> vector<128x128xf32>
    %17 = vector.broadcast %13 : vector<1x128xf32> to vector<128x128xf32>
    %18 = arith.addf %16, %17 : vector<128x128xf32>
    %cst_15 = arith.constant 0.000000e+00 : f32
    %19 = vector.broadcast %cst_15 : f32 to vector<128x128xf32>
    %20 = arith.maximumf %18, %19 : vector<128x128xf32>
    %21 = arith.truncf %20 : vector<128x128xf32> to vector<128x128xbf16>
    %c0_16 = arith.constant 0 : index
    %c0_17 = arith.constant 0 : index
    %22 = vector.load %arg6[%c0_16, %c0_17] : memref<128x128xbf16, #tpu.memory_space<vmem>>, vector<128x128xbf16>
    %c0_18 = arith.constant 0 : index
    %c0_19 = arith.constant 0 : index
    %23 = vector.load %arg7[%c0_18, %c0_19] : memref<1x128xf32, #tpu.memory_space<vmem>>, vector<1x128xf32>
    %cst_20 = arith.constant dense<0.000000e+00> : vector<128x128xf32>
    %24 = tpu.matmul %21, %22, %cst_20 {dimension_numbers = #tpu.dot_dimension_numbers<[1], [0], [0], [1], [0, 0, 1, 1], [], []>} : vector<128x128xbf16>, vector<128x128xbf16>, vector<128x128xf32> -> vector<128x128xf32>
    %25 = arith.truncf %24 : vector<128x128xf32> to vector<128x128xbf16>
    %cst_21 = arith.constant dense<0.000000e+00> : vector<128x128xf32>
    %26 = tpu.matmul %0, %25, %cst_21 {dimension_numbers = #tpu.dot_dimension_numbers<[1], [0], [0], [1], [0, 0, 1, 1], [], []>} : vector<128x128xbf16>, vector<128x128xbf16>, vector<128x128xf32> -> vector<128x128xf32>
    %27 = vector.broadcast %23 : vector<1x128xf32> to vector<128x128xf32>
    %28 = arith.addf %26, %27 : vector<128x128xf32>
    %c0_22 = arith.constant 0 : index
    %c0_23 = arith.constant 0 : index
    %29 = vector.load %arg8[%c0_22, %c0_23] : memref<128x128xf32, #tpu.memory_space<vmem>>, vector<128x128xf32>
    tpu.vector_store %arg8[%c0_22, %c0_23], %28 {strides = array<i32>} : memref<128x128xf32, #tpu.memory_space<vmem>>, vector<128x128xf32>,
    return
  }
}

</mosaic_0001>

<bundles_post_ra>
// kernel: gcn_forward.1
= control target key start
LH: loop header
LB: loop body
LE: loop exit
PB: predicated region body
PF: predicated region fallthrough
CT: control target
= control target key end

     0   :  { %s1678_s2 = inlined_call_operand.vmem [shape: bf16[128,128], index: 2, kind: input, shape index: {}]   ;;  %s1679_s1 = inlined_call_operand.vmem [shape: bf16[128,128], index: 1, kind: input, shape index: {}]   ;;  %s1680_s0 = inlined_call_operand.vmem [shape: bf16[128,128], index: 0, kind: input, shape index: {}]   ;;  %s1681_s4 = inlined_call_operand.vmem [shape: bf16[128,128], index: 4, kind: input, shape index: {}]   ;;  %s1682_s3 = inlined_call_operand.vmem [shape: f32[1,128], index: 3, kind: input, shape index: {}]   ;;  %s1683_s6 = inlined_call_operand.vmem [shape: bf16[128,128], index: 6, kind: input, shape index: {}]   ;;  %s1684_s5 = inlined_call_operand.vmem [shape: f32[1,128], index: 5, kind: input, shape index: {}]   ;;  %s1685_s7 = inlined_call_operand.vmem [shape: f32[1,128], index: 7, kind: input, shape index: {}]   ;;  %s1686_s8 = inlined_call_operand.vmem [shape: f32[128,128], index: 8, kind: output, shape index: {}]  }
   0x1   :  { %v1376_v0 = vld [vmem:[%s1678_s2] sm:$0xff]   ;;  %v1377_v1 = vld [vmem:[%s1678_s2 + $0x8] sm:$0xff]   ;;  %v1378_v2 = vld [vmem:[%s1678_s2 + $0x10] sm:$0xff]  }
   0x2   :  { %1184 = vmatprep.subr.bf16.mxu0 %v1376_v0  ;;  %v1379_v3 = vld [vmem:[%s1678_s2 + $0x18] sm:$0xff]   ;;  %v1384_v4 = vld [vmem:[%s1679_s1] sm:$0xff]   ;;  %v1381_v6 = vld [vmem:[%s1678_s2 + $0x28] sm:$0xff]  }
   0x3   :  { %1185 = vmatpush3.bf16.msra.mxu0 %v1376_v0  ;;  %1200 = vmatprep.mubr.bf16.mxu0 %v1384_v4  ;;  %v1380_v5 = vld [vmem:[%s1678_s2 + $0x20] sm:$0xff]   ;;  %v1382_v7 = vld [vmem:[%s1678_s2 + $0x30] sm:$0xff]   ;;  %v1383_v8 = vld [vmem:[%s1678_s2 + $0x38] sm:$0xff]  }
   0x4   :  { %1186 = vmatprep.subr.bf16.mxu0 %v1377_v1  ;;  %v1385_v9 = vld [vmem:[%s1679_s1 + $0x8] sm:$0xff]   ;;  %v1386_v10 = vld [vmem:[%s1679_s1 + $0x10] sm:$0xff]   ;;  %v1387_v11 = vld [vmem:[%s1679_s1 + $0x18] sm:$0xff]  }
   0x5   :  { %v1388_v12 = vld [vmem:[%s1679_s1 + $0x20] sm:$0xff]   ;;  %v1389_v13 = vld [vmem:[%s1679_s1 + $0x28] sm:$0xff]   ;;  %v1390_v14 = vld [vmem:[%s1679_s1 + $0x30] sm:$0xff]  }
   0x6   :  { %v1391_v15 = vld [vmem:[%s1679_s1 + $0x38] sm:$0xff]   ;;  %v1512_v16 = vld [vmem:[%s1680_s0] sm:$0xff]   ;;  %v1401_v18 = vld [vmem:[%s1681_s4 + $0x8] sm:$0xff]  }
   0x7   :  { %1187 = vmatpush3.bf16.msra.mxu0 %v1377_v1  ;;  %1232 = vmatprep.mubr.bf16.mxu1 %v1512_v16  ;;  %v1400_v17 = vld [vmem:[%s1681_s4] sm:$0xff]   ;;  %v1402_v19 = vld [vmem:[%s1681_s4 + $0x10] sm:$0xff]   ;;  %v1403_v20 = vld [vmem:[%s1681_s4 + $0x18] sm:$0xff]  }
   0x8   :  { %1188 = vmatprep.subr.bf16.mxu0 %v1378_v2  ;;  %v1404_v21 = vld [vmem:[%s1681_s4 + $0x20] sm:$0xff]   ;;  %v1405_v22 = vld [vmem:[%s1681_s4 + $0x28] sm:$0xff]   ;;  %v1541_v48 = vld [vmem:[%s1680_s0 + $0x10] sm:$0xff]  }
   0x9   :  { %v1536_v47 = vld [vmem:[%s1680_s0 + $0x8] sm:$0xff]   ;;  %v1548_v49 = vld [vmem:[%s1680_s0 + $0x18] sm:$0xff]   ;;  %v1553_v50 = vld [vmem:[%s1680_s0 + $0x20] sm:$0xff]  }
   0xa   :  { %v1560_v51 = vld [vmem:[%s1680_s0 + $0x28] sm:$0xff]   ;;  %v1565_v52 = vld [vmem:[%s1680_s0 + $0x30] sm:$0xff]   ;;  %v1572_v53 = vld [vmem:[%s1680_s0 + $0x38] sm:$0xff]  }
   0xb   :  { %1189 = vmatpush3.bf16.msra.mxu0 %v1378_v2  ;;  %v1406_v54 = vld [vmem:[%s1681_s4 + $0x30] sm:$0xff]   ;;  %v1407_v55 = vld [vmem:[%s1681_s4 + $0x38] sm:$0xff]   ;;  %v1061_v56 = vld [vmem:[%s1682_s3] ss:$0 sm:$0xff] }
   0xc   :  { %1190 = vmatprep.subr.bf16.mxu0 %v1379_v3 }
   0xf   :  { %1191 = vmatpush3.bf16.msra.mxu0 %v1379_v3 }
  0x10   :  { %1192 = vmatprep.subr.bf16.mxu0 %v1380_v5 }
  0x13   :  { %1193 = vmatpush3.bf16.msra.mxu0 %v1380_v5 }
  0x14   :  { %1194 = vmatprep.subr.bf16.mxu0 %v1381_v6 }
  0x17   :  { %1195 = vmatpush3.bf16.msra.mxu0 %v1381_v6 }
  0x18   :  { %1196 = vmatprep.subr.bf16.mxu0 %v1382_v7 }
  0x1b   :  { %1197 = vmatpush3.bf16.msra.mxu0 %v1382_v7 }
  0x1c   :  { %1198 = vmatprep.subr.bf16.mxu0 %v1383_v8 }
  0x1f   :  { %1199 = vmatpush3.bf16.msra.mxu0 %v1383_v8 }
  0x20   :  { %1248 = vmatprep.subr.bf16.mxu0 %v1400_v17 }
  0x22   :  { %1201 = vmatmul.mubr.bf16.vlgmr.msra.gmra.mrb[0].mxu0 %v1385_v9 }
  0x23   :  { %1204 = vmatprep.mubr.bf16.mxu0 %v1386_v10  ;;  %1249 = vmatpush3.bf16.msra.mxu0 %v1400_v17 }
  0x24   :  { %1250 = vmatprep.subr.bf16.mxu0 %v1401_v18 }
  0x27   :  { %1251 = vmatpush3.bf16.msra.mxu0 %v1401_v18 }
  0x28   :  { %1252 = vmatprep.subr.bf16.mxu0 %v1402_v19 }
  0x2a   :  { %1205 = vmatmul.mubr.bf16.gmra.mrb[4].mxu0 %v1387_v11 }
  0x2b   :  { %1208 = vmatprep.mubr.bf16.mxu0 %v1388_v12  ;;  %1253 = vmatpush3.bf16.msra.mxu0 %v1402_v19 }
  0x2c   :  { %1254 = vmatprep.subr.bf16.mxu0 %v1403_v20 }
  0x2f   :  { %1255 = vmatpush3.bf16.msra.mxu0 %v1403_v20 }
  0x30   :  { %1256 = vmatprep.subr.bf16.mxu0 %v1404_v21 }
  0x32   :  { %1209 = vmatmul.mubr.bf16.gmra.mrb[8].mxu0 %v1389_v13 }
  0x33   :  { %1212 = vmatprep.mubr.bf16.mxu0 %v1390_v14  ;;  %1257 = vmatpush3.bf16.msra.mxu0 %v1404_v21 }
  0x34   :  { %1258 = vmatprep.subr.bf16.mxu0 %v1405_v22 }
  0x37   :  { %1259 = vmatpush3.bf16.msra.mxu0 %v1405_v22 }
  0x38   :  { %1260 = vmatprep.subr.bf16.mxu0 %v1406_v54 }
  0x3a   :  { %1213 = vmatmul.mubr.bf16.gmra.mrb[12].mxu0 %v1391_v15 }
  0x3b   :  { %1261 = vmatpush3.bf16.msra.mxu0 %v1406_v54 }
  0x3c   :  { %1262 = vmatprep.subr.bf16.mxu0 %v1407_v55 }
  0x3f   :  { %1263 = vmatpush3.bf16.msra.mxu0 %v1407_v55 }
  0xf5   :  { %v1202_v23 = vpop.f32.mrb[0].mxu0 }
  0xf6   :  { %v209_v24 = vpop.f32.mrb[1].mxu0 }
  0xf7   :  { %v1203_v25 = vpop.f32.mrb[2].mxu0 }
  0xf8   :  { %v273_v26 = vpack.c.bf16 %v1203_v25, %v1202_v23  ;;  %v212_v27 = vpop.f32.mrb[3].mxu0 }
  0xf9   :  { %v272_v28 = vpack.c.bf16 %v212_v27, %v209_v24 }
  0xfb   :  { %1216 = vmatprep.subr.bf16.mxu1 %v272_v28 }
  0xfc   :  { %1217 = vmatpush3.bf16.msra.mxu1 %v272_v28 }
  0xfd   :  { %v1206_v29 = vpop.f32.mrb[4].mxu0  ;;  %1218 = vmatprep.subr.bf16.mxu1 %v273_v26 }
  0xfe   :  { %v225_v30 = vpop.f32.mrb[5].mxu0 }
  0xff   :  { %v1207_v31 = vpop.f32.mrb[6].mxu0 }
 0x100   :  { %v275_v32 = vpack.c.bf16 %v1207_v31, %v1206_v29  ;;  %v228_v33 = vpop.f32.mrb[7].mxu0  ;;  %1219 = vmatpush3.bf16.msra.mxu1 %v273_v26 }
 0x101   :  { %v274_v34 = vpack.c.bf16 %v228_v33, %v225_v30 }
 0x103   :  { %1220 = vmatprep.subr.bf16.mxu1 %v274_v34 }
 0x104   :  { %1221 = vmatpush3.bf16.msra.mxu1 %v274_v34 }
 0x105   :  { %v1210_v35 = vpop.f32.mrb[8].mxu0  ;;  %1222 = vmatprep.subr.bf16.mxu1 %v275_v32 }
 0x106   :  { %v241_v36 = vpop.f32.mrb[9].mxu0 }
 0x107   :  { %v1211_v37 = vpop.f32.mrb[10].mxu0 }
 0x108   :  { %v277_v38 = vpack.c.bf16 %v1211_v37, %v1210_v35  ;;  %v244_v39 = vpop.f32.mrb[11].mxu0  ;;  %1223 = vmatpush3.bf16.msra.mxu1 %v275_v32 }
 0x109   :  { %v276_v40 = vpack.c.bf16 %v244_v39, %v241_v36 }
 0x10b   :  { %1224 = vmatprep.subr.bf16.mxu1 %v276_v40 }
 0x10c   :  { %1225 = vmatpush3.bf16.msra.mxu1 %v276_v40 }
 0x10d   :  { %v1214_v41 = vpop.f32.mrb[12].mxu0  ;;  %1226 = vmatprep.subr.bf16.mxu1 %v277_v38 }
 0x10e   :  { %v257_v42 = vpop.f32.mrb[13].mxu0 }
 0x10f   :  { %v1215_v43 = vpop.f32.mrb[14].mxu0 }
 0x110   :  { %v279_v44 = vpack.c.bf16 %v1215_v43, %v1214_v41  ;;  %v260_v45 = vpop.f32.mrb[15].mxu0  ;;  %1227 = vmatpush3.bf16.msra.mxu1 %v277_v38 }
 0x111   :  { %v278_v46 = vpack.c.bf16 %v260_v45, %v257_v42 }
 0x113   :  { %1228 = vmatprep.subr.bf16.mxu1 %v278_v46 }
 0x114   :  { %1229 = vmatpush3.bf16.msra.mxu1 %v278_v46 }
 0x115   :  { %1230 = vmatprep.subr.bf16.mxu1 %v279_v44 }
 0x118   :  { %1231 = vmatpush3.bf16.msra.mxu1 %v279_v44 }
 0x11b   :  { %1233 = vmatmul.mubr.bf16.vlgmr.msra.gmra.mrb[0].mxu1 %v1536_v47 }
 0x11c   :  { %1236 = vmatprep.mubr.bf16.mxu1 %v1541_v48 }
 0x123   :  { %1237 = vmatmul.mubr.bf16.gmra.mrb[4].mxu1 %v1548_v49 }
 0x124   :  { %1240 = vmatprep.mubr.bf16.mxu1 %v1553_v50 }
 0x12b   :  { %1241 = vmatmul.mubr.bf16.gmra.mrb[8].mxu1 %v1560_v51 }
 0x12c   :  { %1244 = vmatprep.mubr.bf16.mxu1 %v1565_v52 }
 0x133   :  { %1245 = vmatmul.mubr.bf16.gmra.mrb[12].mxu1 %v1572_v53 }
 0x134   :  { %1296 = vmatprep.mubr.bf16.mxu1 %v1512_v16 }
 0x1ee   :  { %v1234_v57 = vpop.f32.mrb[0].mxu1 }
 0x1ef   :  { %v377_v58 = vadd.f32 %v1234_v57, %v1061_v56  ;;  %v368_v59 = vpop.f32.mrb[1].mxu1 }
 0x1f0   :  { %v369_v60 = vadd.f32 %v1061_v56, %v368_v59  ;;  %v1235_v61 = vpop.f32.mrb[2].mxu1  ;;  %v1409_v59 = vld [vmem:[%s1683_s6 + $0x8] sm:$0xff]  }
 0x1f1   :  { %v380_v62 = vadd.f32 %v1235_v61, %v1061_v56  ;;  %v371_v63 = vpop.f32.mrb[3].mxu1  ;;  %v433_v1 = vmax.f32 %v377_v58, 0.0  ;;  %v1408_v58 = vld [vmem:[%s1683_s6] sm:$0xff]  }
 0x1f2   :  { %v372_v0 = vadd.f32 %v1061_v56, %v371_v63  ;;  %v431_v3 = vmax.f32 %v369_v60, 0.0  ;;  %1312 = vmatprep.subr.bf16.mxu0 %v1408_v58  ;;  %v1411_v60 = vld [vmem:[%s1683_s6 + $0x18] sm:$0xff]   ;;  %v1412_v61 = vld [vmem:[%s1683_s6 + $0x20] sm:$0xff]  }
 0x1f3   :  { %v434_v2 = vmax.f32 %v380_v62, 0.0  ;;  %v1413_v62 = vld [vmem:[%s1683_s6 + $0x28] sm:$0xff]  }
 0x1f4   :  { %v432_v4 = vmax.f32 %v372_v0, 0.0 }
 0x1f5   :  { %v448_v5 = vpack.c.bf16 %v434_v2, %v433_v1 }
 0x1f6   :  { %v447_v6 = vpack.c.bf16 %v432_v4, %v431_v3  ;;  %v1238_v7 = vpop.f32.mrb[4].mxu1 }
 0x1f7   :  { %v393_v8 = vadd.f32 %v1238_v7, %v1061_v56  ;;  %v384_v9 = vpop.f32.mrb[5].mxu1 }
 0x1f8   :  { %v385_v10 = vadd.f32 %v1061_v56, %v384_v9  ;;  %v1239_v11 = vpop.f32.mrb[6].mxu1  ;;  %1264 = vmatprep.mubr.bf16.mxu0 %v447_v6 }
 0x1f9   :  { %v396_v12 = vadd.f32 %v1239_v11, %v1061_v56  ;;  %v387_v13 = vpop.f32.mrb[7].mxu1  ;;  %1265 = vmatmul.mubr.bf16.vlgmr.msra.gmra.mrb[16].mxu0 %v448_v5  ;;  %v437_v15 = vmax.f32 %v393_v8, 0.0 }
 0x1fa   :  { %v388_v14 = vadd.f32 %v1061_v56, %v387_v13  ;;  %v435_v18 = vmax.f32 %v385_v10, 0.0  ;;  %1313 = vmatpush3.bf16.msra.mxu0 %v1408_v58 }
 0x1fb   :  { %v438_v17 = vmax.f32 %v396_v12, 0.0  ;;  %1314 = vmatprep.subr.bf16.mxu0 %v1409_v59 }
 0x1fc   :  { %v436_v19 = vmax.f32 %v388_v14, 0.0 }
 0x1fd   :  { %v450_v20 = vpack.c.bf16 %v438_v17, %v437_v15 }
 0x1fe   :  { %v449_v21 = vpack.c.bf16 %v436_v19, %v435_v18  ;;  %v1242_v22 = vpop.f32.mrb[8].mxu1  ;;  %1315 = vmatpush3.bf16.msra.mxu0 %v1409_v59 }
 0x1ff   :  { %v409_v23 = vadd.f32 %v1242_v22, %v1061_v56  ;;  %v400_v24 = vpop.f32.mrb[9].mxu1 }
 0x200   :  { %v401_v25 = vadd.f32 %v1061_v56, %v400_v24  ;;  %v1243_v26 = vpop.f32.mrb[10].mxu1  ;;  %1268 = vmatprep.mubr.bf16.mxu0 %v449_v21  ;;  %v1414_v24 = vld [vmem:[%s1683_s6 + $0x30] sm:$0xff]  }
 0x201   :  { %v412_v27 = vadd.f32 %v1243_v26, %v1061_v56  ;;  %v403_v28 = vpop.f32.mrb[11].mxu1  ;;  %1269 = vmatmul.mubr.bf16.gmra.mrb[20].mxu0 %v450_v20  ;;  %v441_v30 = vmax.f32 %v409_v23, 0.0  ;;  %v1078_v26 = vld [vmem:[%s1684_s5] ss:$0 sm:$0xff] }
 0x202   :  { %v404_v29 = vadd.f32 %v1061_v56, %v403_v28  ;;  %v439_v32 = vmax.f32 %v401_v25, 0.0  ;;  %v1415_v25 = vld [vmem:[%s1683_s6 + $0x38] sm:$0xff]  }
 0x203   :  { %v442_v31 = vmax.f32 %v412_v27, 0.0 }
 0x204   :  { %v440_v33 = vmax.f32 %v404_v29, 0.0 }
 0x205   :  { %v452_v34 = vpack.c.bf16 %v442_v31, %v441_v30 }
 0x206   :  { %v451_v35 = vpack.c.bf16 %v440_v33, %v439_v32  ;;  %v1246_v36 = vpop.f32.mrb[12].mxu1 }
 0x207   :  { %v425_v37 = vadd.f32 %v1246_v36, %v1061_v56  ;;  %v416_v38 = vpop.f32.mrb[13].mxu1 }
 0x208   :  { %v417_v39 = vadd.f32 %v1061_v56, %v416_v38  ;;  %v1247_v40 = vpop.f32.mrb[14].mxu1  ;;  %1272 = vmatprep.mubr.bf16.mxu0 %v451_v35 }
 0x209   :  { %v428_v41 = vadd.f32 %v1247_v40, %v1061_v56  ;;  %v419_v42 = vpop.f32.mrb[15].mxu1  ;;  %1273 = vmatmul.mubr.bf16.gmra.mrb[24].mxu0 %v452_v34  ;;  %v445_v44 = vmax.f32 %v425_v37, 0.0 }
 0x20a   :  { %v420_v43 = vadd.f32 %v1061_v56, %v419_v42  ;;  %v443_v46 = vmax.f32 %v417_v39, 0.0  ;;  %v1410_v56 = vld [vmem:[%s1683_s6 + $0x10] sm:$0xff]  }
 0x20b   :  { %v446_v45 = vmax.f32 %v428_v41, 0.0  ;;  %1316 = vmatprep.subr.bf16.mxu0 %v1410_v56 }
 0x20c   :  { %v444_v54 = vmax.f32 %v420_v43, 0.0  ;;  %1317 = vmatpush3.bf16.msra.mxu0 %v1410_v56 }
 0x20d   :  { %v454_v55 = vpack.c.bf16 %v446_v45, %v445_v44  ;;  %1318 = vmatprep.subr.bf16.mxu0 %v1411_v60 }
 0x20e   :  { %v453_v57 = vpack.c.bf16 %v444_v54, %v443_v46 }
 0x210   :  { %1276 = vmatprep.mubr.bf16.mxu0 %v453_v57  ;;  %1319 = vmatpush3.bf16.msra.mxu0 %v1411_v60 }
 0x211   :  { %1277 = vmatmul.mubr.bf16.gmra.mrb[28].mxu0 %v454_v55  ;;  %1320 = vmatprep.subr.bf16.mxu0 %v1412_v61 }
 0x214   :  { %1321 = vmatpush3.bf16.msra.mxu0 %v1412_v61 }
 0x215   :  { %1322 = vmatprep.subr.bf16.mxu0 %v1413_v62 }
 0x218   :  { %1323 = vmatpush3.bf16.msra.mxu0 %v1413_v62 }
 0x219   :  { %1324 = vmatprep.subr.bf16.mxu0 %v1414_v24 }
 0x21c   :  { %1325 = vmatpush3.bf16.msra.mxu0 %v1414_v24 }
 0x21d   :  { %1326 = vmatprep.subr.bf16.mxu0 %v1415_v25 }
 0x220   :  { %1327 = vmatpush3.bf16.msra.mxu0 %v1415_v25 }
 0x2cc   :  { %v1266_v63 = vpop.f32.mrb[16].mxu0 }
 0x2cd   :  { %v554_v0 = vpop.f32.mrb[17].mxu0 }
 0x2ce   :  { %v1267_v1 = vpop.f32.mrb[18].mxu0 }
 0x2cf   :  { %v618_v2 = vpack.c.bf16 %v1267_v1, %v1266_v63  ;;  %v557_v3 = vpop.f32.mrb[19].mxu0 }
 0x2d0   :  { %v617_v4 = vpack.c.bf16 %v557_v3, %v554_v0 }
 0x2d2   :  { %1280 = vmatprep.subr.bf16.mxu1 %v617_v4 }
 0x2d3   :  { %1281 = vmatpush3.bf16.msra.mxu1 %v617_v4 }
 0x2d4   :  { %v1270_v5 = vpop.f32.mrb[20].mxu0  ;;  %1282 = vmatprep.subr.bf16.mxu1 %v618_v2 }
 0x2d5   :  { %v570_v6 = vpop.f32.mrb[21].mxu0 }
 0x2d6   :  { %v1271_v7 = vpop.f32.mrb[22].mxu0 }
 0x2d7   :  { %v620_v8 = vpack.c.bf16 %v1271_v7, %v1270_v5  ;;  %v573_v9 = vpop.f32.mrb[23].mxu0  ;;  %1283 = vmatpush3.bf16.msra.mxu1 %v618_v2 }
 0x2d8   :  { %v619_v10 = vpack.c.bf16 %v573_v9, %v570_v6 }
 0x2da   :  { %1284 = vmatprep.subr.bf16.mxu1 %v619_v10 }
 0x2db   :  { %1285 = vmatpush3.bf16.msra.mxu1 %v619_v10 }
 0x2dc   :  { %v1274_v11 = vpop.f32.mrb[24].mxu0  ;;  %1286 = vmatprep.subr.bf16.mxu1 %v620_v8 }
 0x2dd   :  { %v586_v12 = vpop.f32.mrb[25].mxu0 }
 0x2de   :  { %v1275_v13 = vpop.f32.mrb[26].mxu0 }
 0x2df   :  { %v622_v14 = vpack.c.bf16 %v1275_v13, %v1274_v11  ;;  %v589_v15 = vpop.f32.mrb[27].mxu0  ;;  %1287 = vmatpush3.bf16.msra.mxu1 %v620_v8 }
 0x2e0   :  { %v621_v17 = vpack.c.bf16 %v589_v15, %v586_v12 }
 0x2e2   :  { %1288 = vmatprep.subr.bf16.mxu1 %v621_v17 }
 0x2e3   :  { %1289 = vmatpush3.bf16.msra.mxu1 %v621_v17 }
 0x2e4   :  { %v1278_v18 = vpop.f32.mrb[28].mxu0  ;;  %1290 = vmatprep.subr.bf16.mxu1 %v622_v14 }
 0x2e5   :  { %v602_v19 = vpop.f32.mrb[29].mxu0 }
 0x2e6   :  { %v1279_v20 = vpop.f32.mrb[30].mxu0 }
 0x2e7   :  { %v624_v21 = vpack.c.bf16 %v1279_v20, %v1278_v18  ;;  %v605_v22 = vpop.f32.mrb[31].mxu0  ;;  %1291 = vmatpush3.bf16.msra.mxu1 %v622_v14 }
 0x2e8   :  { %v623_v23 = vpack.c.bf16 %v605_v22, %v602_v19 }
 0x2ea   :  { %1292 = vmatprep.subr.bf16.mxu1 %v623_v23 }
 0x2eb   :  { %1293 = vmatpush3.bf16.msra.mxu1 %v623_v23 }
 0x2ec   :  { %1294 = vmatprep.subr.bf16.mxu1 %v624_v21 }
 0x2ef   :  { %1295 = vmatpush3.bf16.msra.mxu1 %v624_v21 }
 0x2f2   :  { %1297 = vmatmul.mubr.bf16.vlgmr.msra.gmra.mrb[16].mxu1 %v1536_v47 }
 0x2f3   :  { %1300 = vmatprep.mubr.bf16.mxu1 %v1541_v48 }
 0x2fa   :  { %1301 = vmatmul.mubr.bf16.gmra.mrb[20].mxu1 %v1548_v49 }
 0x2fb   :  { %1304 = vmatprep.mubr.bf16.mxu1 %v1553_v50 }
 0x302   :  { %1305 = vmatmul.mubr.bf16.gmra.mrb[24].mxu1 %v1560_v51 }
 0x303   :  { %1308 = vmatprep.mubr.bf16.mxu1 %v1565_v52 }
 0x30a   :  { %1309 = vmatmul.mubr.bf16.gmra.mrb[28].mxu1 %v1572_v53 }
 0x30b   :  { %1360 = vmatprep.mubr.bf16.mxu1 %v1512_v16 }
 0x3c5   :  { %v1298_v27 = vpop.f32.mrb[16].mxu1 }
 0x3c6   :  { %v674_v28 = vadd.f32 %v1298_v27, %v1078_v26  ;;  %v665_v29 = vpop.f32.mrb[17].mxu1 }
 0x3c7   :  { %v666_v16 = vadd.f32 %v1078_v26, %v665_v29  ;;  %v1299_v30 = vpop.f32.mrb[18].mxu1 }
 0x3c8   :  { %v677_v31 = vadd.f32 %v1299_v30, %v1078_v26  ;;  %v668_v32 = vpop.f32.mrb[19].mxu1  ;;  %v730_v34 = vmax.f32 %v674_v28, 0.0 }
 0x3c9   :  { %v669_v33 = vadd.f32 %v1078_v26, %v668_v32  ;;  %v728_v36 = vmax.f32 %v666_v16, 0.0 }
 0x3ca   :  { %v731_v35 = vmax.f32 %v677_v31, 0.0 }
 0x3cb   :  { %v729_v37 = vmax.f32 %v669_v33, 0.0 }
 0x3cc   :  { %v745_v38 = vpack.c.bf16 %v731_v35, %v730_v34 }
 0x3cd   :  { %v744_v39 = vpack.c.bf16 %v729_v37, %v728_v36  ;;  %v1302_v40 = vpop.f32.mrb[20].mxu1 }
 0x3ce   :  { %v690_v41 = vadd.f32 %v1302_v40, %v1078_v26  ;;  %v681_v42 = vpop.f32.mrb[21].mxu1 }
 0x3cf   :  { %v682_v43 = vadd.f32 %v1078_v26, %v681_v42  ;;  %v1303_v44 = vpop.f32.mrb[22].mxu1  ;;  %1328 = vmatprep.mubr.bf16.mxu0 %v744_v39 }
 0x3d0   :  { %v693_v45 = vadd.f32 %v1303_v44, %v1078_v26  ;;  %v684_v46 = vpop.f32.mrb[23].mxu1  ;;  %1329 = vmatmul.mubr.bf16.vlgmr.msra.gmra.mrb[32].mxu0 %v745_v38  ;;  %v734_v55 = vmax.f32 %v690_v41, 0.0 }
 0x3d1   :  { %v685_v54 = vadd.f32 %v1078_v26, %v684_v46  ;;  %v732_v58 = vmax.f32 %v682_v43, 0.0 }
 0x3d2   :  { %v735_v57 = vmax.f32 %v693_v45, 0.0 }
 0x3d3   :  { %v733_v59 = vmax.f32 %v685_v54, 0.0 }
 0x3d4   :  { %v747_v56 = vpack.c.bf16 %v735_v57, %v734_v55  ;;  %v1087_v57 = vld [vmem:[%s1685_s7] ss:$0 sm:$0xff] }
 0x3d5   :  { %v746_v60 = vpack.c.bf16 %v733_v59, %v732_v58  ;;  %v1306_v61 = vpop.f32.mrb[24].mxu1 }
 0x3d6   :  { %v706_v62 = vadd.f32 %v1306_v61, %v1078_v26  ;;  %v697_v63 = vpop.f32.mrb[25].mxu1 }
 0x3d7   :  { %v698_v0 = vadd.f32 %v1078_v26, %v697_v63  ;;  %v1307_v1 = vpop.f32.mrb[26].mxu1  ;;  %1332 = vmatprep.mubr.bf16.mxu0 %v746_v60 }
 0x3d8   :  { %v709_v2 = vadd.f32 %v1307_v1, %v1078_v26  ;;  %v700_v3 = vpop.f32.mrb[27].mxu1  ;;  %1333 = vmatmul.mubr.bf16.gmra.mrb[36].mxu0 %v747_v56  ;;  %v738_v5 = vmax.f32 %v706_v62, 0.0 }
 0x3d9   :  { %v701_v4 = vadd.f32 %v1078_v26, %v700_v3  ;;  %v736_v7 = vmax.f32 %v698_v0, 0.0 }
 0x3da   :  { %v739_v6 = vmax.f32 %v709_v2, 0.0 }
 0x3db   :  { %v737_v8 = vmax.f32 %v701_v4, 0.0 }
 0x3dc   :  { %v749_v9 = vpack.c.bf16 %v739_v6, %v738_v5 }
 0x3dd   :  { %v748_v10 = vpack.c.bf16 %v737_v8, %v736_v7  ;;  %v1310_v11 = vpop.f32.mrb[28].mxu1 }
 0x3de   :  { %v722_v12 = vadd.f32 %v1310_v11, %v1078_v26  ;;  %v713_v13 = vpop.f32.mrb[29].mxu1 }
 0x3df   :  { %v714_v14 = vadd.f32 %v1078_v26, %v713_v13  ;;  %v1311_v15 = vpop.f32.mrb[30].mxu1  ;;  %1336 = vmatprep.mubr.bf16.mxu0 %v748_v10 }
 0x3e0   :  { %v725_v17 = vadd.f32 %v1311_v15, %v1078_v26  ;;  %v716_v18 = vpop.f32.mrb[31].mxu1  ;;  %1337 = vmatmul.mubr.bf16.gmra.mrb[40].mxu0 %v749_v9  ;;  %v742_v20 = vmax.f32 %v722_v12, 0.0 }
 0x3e1   :  { %v717_v19 = vadd.f32 %v1078_v26, %v716_v18  ;;  %v740_v22 = vmax.f32 %v714_v14, 0.0 }
 0x3e2   :  { %v743_v21 = vmax.f32 %v725_v17, 0.0 }
 0x3e3   :  { %v741_v23 = vmax.f32 %v717_v19, 0.0 }
 0x3e4   :  { %v751_v24 = vpack.c.bf16 %v743_v21, %v742_v20 }
 0x3e5   :  { %v750_v25 = vpack.c.bf16 %v741_v23, %v740_v22 }
 0x3e7   :  { %1340 = vmatprep.mubr.bf16.mxu0 %v750_v25 }
 0x3e8   :  { %1341 = vmatmul.mubr.bf16.gmra.mrb[44].mxu0 %v751_v24 }
 0x4a3   :  { %v1330_v27 = vpop.f32.mrb[32].mxu0 }
 0x4a4   :  { %v851_v28 = vpop.f32.mrb[33].mxu0 }
 0x4a5   :  { %v1331_v29 = vpop.f32.mrb[34].mxu0 }
 0x4a6   :  { %v915_v16 = vpack.c.bf16 %v1331_v29, %v1330_v27  ;;  %v854_v30 = vpop.f32.mrb[35].mxu0 }
 0x4a7   :  { %v914_v31 = vpack.c.bf16 %v854_v30, %v851_v28 }
 0x4a9   :  { %1344 = vmatprep.subr.bf16.mxu1 %v914_v31 }
 0x4aa   :  { %1345 = vmatpush3.bf16.msra.mxu1 %v914_v31 }
 0x4ab   :  { %v1334_v32 = vpop.f32.mrb[36].mxu0  ;;  %1346 = vmatprep.subr.bf16.mxu1 %v915_v16 }
 0x4ac   :  { %v867_v33 = vpop.f32.mrb[37].mxu0 }
 0x4ad   :  { %v1335_v26 = vpop.f32.mrb[38].mxu0 }
 0x4ae   :  { %v917_v34 = vpack.c.bf16 %v1335_v26, %v1334_v32  ;;  %v870_v35 = vpop.f32.mrb[39].mxu0  ;;  %1347 = vmatpush3.bf16.msra.mxu1 %v915_v16 }
 0x4af   :  { %v916_v36 = vpack.c.bf16 %v870_v35, %v867_v33 }
 0x4b1   :  { %1348 = vmatprep.subr.bf16.mxu1 %v916_v36 }
 0x4b2   :  { %1349 = vmatpush3.bf16.msra.mxu1 %v916_v36 }
 0x4b3   :  { %v1338_v37 = vpop.f32.mrb[40].mxu0  ;;  %1350 = vmatprep.subr.bf16.mxu1 %v917_v34 }
 0x4b4   :  { %v883_v38 = vpop.f32.mrb[41].mxu0 }
 0x4b5   :  { %v1339_v39 = vpop.f32.mrb[42].mxu0 }
 0x4b6   :  { %v919_v40 = vpack.c.bf16 %v1339_v39, %v1338_v37  ;;  %v886_v41 = vpop.f32.mrb[43].mxu0  ;;  %1351 = vmatpush3.bf16.msra.mxu1 %v917_v34 }
 0x4b7   :  { %v918_v42 = vpack.c.bf16 %v886_v41, %v883_v38 }
 0x4b9   :  { %1352 = vmatprep.subr.bf16.mxu1 %v918_v42 }
 0x4ba   :  { %1353 = vmatpush3.bf16.msra.mxu1 %v918_v42 }
 0x4bb   :  { %v1342_v43 = vpop.f32.mrb[44].mxu0  ;;  %1354 = vmatprep.subr.bf16.mxu1 %v919_v40 }
 0x4bc   :  { %v899_v44 = vpop.f32.mrb[45].mxu0 }
 0x4bd   :  { %v1343_v45 = vpop.f32.mrb[46].mxu0 }
 0x4be   :  { %v921_v46 = vpack.c.bf16 %v1343_v45, %v1342_v43  ;;  %v902_v54 = vpop.f32.mrb[47].mxu0  ;;  %1355 = vmatpush3.bf16.msra.mxu1 %v919_v40 }
 0x4bf   :  { %v920_v55 = vpack.c.bf16 %v902_v54, %v899_v44 }
 0x4c1   :  { %1356 = vmatprep.subr.bf16.mxu1 %v920_v55 }
 0x4c2   :  { %1357 = vmatpush3.bf16.msra.mxu1 %v920_v55 }
 0x4c3   :  { %1358 = vmatprep.subr.bf16.mxu1 %v921_v46 }
 0x4c6   :  { %1359 = vmatpush3.bf16.msra.mxu1 %v921_v46 }
 0x4c9   :  { %1361 = vmatmul.mubr.bf16.vlgmr.msra.gmra.mrb[32].mxu1 %v1536_v47 }
 0x4ca   :  { %1364 = vmatprep.mubr.bf16.mxu1 %v1541_v48 }
 0x4d1   :  { %1365 = vmatmul.mubr.bf16.gmra.mrb[36].mxu1 %v1548_v49 }
 0x4d2   :  { %1368 = vmatprep.mubr.bf16.mxu1 %v1553_v50 }
 0x4d9   :  { %1369 = vmatmul.mubr.bf16.gmra.mrb[40].mxu1 %v1560_v51 }
 0x4da   :  { %1372 = vmatprep.mubr.bf16.mxu1 %v1565_v52 }
 0x4e1   :  { %1373 = vmatmul.mubr.bf16.gmra.mrb[44].mxu1 %v1572_v53 }
 0x59c   :  { %v1362_v58 = vpop.f32.mrb[32].mxu1 }
 0x59d   :  { %v971_v59 = vadd.f32 %v1362_v58, %v1087_v57  ;;  %v962_v56 = vpop.f32.mrb[33].mxu1 }
 0x59e   :  { %v963_v47 = vadd.f32 %v1087_v57, %v962_v56  ;;  %v1363_v60 = vpop.f32.mrb[34].mxu1 }
 0x59f   :  { %1027 = vst [vmem:[%s1686_s8 + $0x10] sm:$0xff] %v971_v59  ;;  %v974_v48 = vadd.f32 %v1363_v60, %v1087_v57  ;;  %v965_v49 = vpop.f32.mrb[35].mxu1 }
 0x5a0   :  { %1025 = vst [vmem:[%s1686_s8] sm:$0xff] %v963_v47  ;;  %v966_v50 = vadd.f32 %v1087_v57, %v965_v49 }
 0x5a1   :  { %1028 = vst [vmem:[%s1686_s8 + $0x18] sm:$0xff] %v974_v48 }
 0x5a2   :  { %1026 = vst [vmem:[%s1686_s8 + $0x8] sm:$0xff] %v966_v50 }
 0x5a4   :  { %v1366_v51 = vpop.f32.mrb[36].mxu1 }
 0x5a5   :  { %v987_v52 = vadd.f32 %v1366_v51, %v1087_v57  ;;  %v978_v53 = vpop.f32.mrb[37].mxu1 }
 0x5a6   :  { %v979_v61 = vadd.f32 %v1087_v57, %v978_v53  ;;  %v1367_v62 = vpop.f32.mrb[38].mxu1 }
 0x5a7   :  { %1031 = vst [vmem:[%s1686_s8 + $0x30] sm:$0xff] %v987_v52  ;;  %v990_v63 = vadd.f32 %v1367_v62, %v1087_v57  ;;  %v981_v0 = vpop.f32.mrb[39].mxu1 }
 0x5a8   :  { %1029 = vst [vmem:[%s1686_s8 + $0x20] sm:$0xff] %v979_v61  ;;  %v982_v1 = vadd.f32 %v1087_v57, %v981_v0 }
 0x5a9   :  { %1032 = vst [vmem:[%s1686_s8 + $0x38] sm:$0xff] %v990_v63 }
 0x5aa   :  { %1030 = vst [vmem:[%s1686_s8 + $0x28] sm:$0xff] %v982_v1 }
 0x5ac   :  { %v1370_v2 = vpop.f32.mrb[40].mxu1 }
 0x5ad   :  { %v1003_v3 = vadd.f32 %v1370_v2, %v1087_v57  ;;  %v994_v4 = vpop.f32.mrb[41].mxu1 }
 0x5ae   :  { %v995_v5 = vadd.f32 %v1087_v57, %v994_v4  ;;  %v1371_v6 = vpop.f32.mrb[42].mxu1 }
 0x5af   :  { %1035 = vst [vmem:[%s1686_s8 + $0x50] sm:$0xff] %v1003_v3  ;;  %v1006_v7 = vadd.f32 %v1371_v6, %v1087_v57  ;;  %v997_v8 = vpop.f32.mrb[43].mxu1 }
 0x5b0   :  { %1033 = vst [vmem:[%s1686_s8 + $0x40] sm:$0xff] %v995_v5  ;;  %v998_v9 = vadd.f32 %v1087_v57, %v997_v8 }
 0x5b1   :  { %1036 = vst [vmem:[%s1686_s8 + $0x58] sm:$0xff] %v1006_v7 }
 0x5b2   :  { %1034 = vst [vmem:[%s1686_s8 + $0x48] sm:$0xff] %v998_v9 }
 0x5b4   :  { %v1374_v10 = vpop.f32.mrb[44].mxu1 }
 0x5b5   :  { %v1019_v11 = vadd.f32 %v1374_v10, %v1087_v57  ;;  %v1010_v12 = vpop.f32.mrb[45].mxu1 }
 0x5b6   :  { %v1011_v13 = vadd.f32 %v1087_v57, %v1010_v12  ;;  %v1375_v14 = vpop.f32.mrb[46].mxu1 }
 0x5b7   :  { %1039 = vst [vmem:[%s1686_s8 + $0x70] sm:$0xff] %v1019_v11  ;;  %v1022_v15 = vadd.f32 %v1375_v14, %v1087_v57  ;;  %v1013_v17 = vpop.f32.mrb[47].mxu1 }
 0x5b8   :  { %1037 = vst [vmem:[%s1686_s8 + $0x60] sm:$0xff] %v1011_v13  ;;  %v1014_v18 = vadd.f32 %v1087_v57, %v1013_v17 }
 0x5b9   :  { %1040 = vst [vmem:[%s1686_s8 + $0x78] sm:$0xff] %v1022_v15 }
 0x5ba   :  { %1038 = vst [vmem:[%s1686_s8 + $0x68] sm:$0xff] %v1014_v18 }

</bundles_post_ra>
